<compile_context>
chip_gen: v7x
topology: tpu7x:2x2x1
jax: 0.10.0
libtpu: 0.0.40
codegen_flags: <defaults>
</compile_context>

<pallas_src>
import jax
import jax.numpy as jnp
from jax.experimental import pallas as pl
from jax.experimental.pallas import tpu as pltpu


def _round_up(n, m):
    return ((n + m - 1) // m) * m


def make_rnn_forward(w_ih, w_hh, b_ih, b_hh, w_fc, b_fc):
    """Pads/casts parameters once and returns a jitted forward(x) callable.

    w_ih: (I, H); w_hh: (H, H); b_ih/b_hh: (1, H); w_fc: (H, 3*O); b_fc: (1, 3*O).
    """
    f32 = jnp.float32
    I, H = w_ih.shape
    O3 = w_fc.shape[1]

    # Padded (lane-dense) feature sizes.
    IP = max(128, _round_up(I, 128))
    HP = max(128, _round_up(H, 128))
    OP = max(128, _round_up(O3, 128))

    # Init-time padding (exact for tanh-RNN: padded hidden lanes stay zero through
    # the recurrence; padded W_fc rows contribute nothing to the output).
    wih_p = jnp.pad(w_ih.astype(f32), ((0, IP - I), (0, HP - H)))
    whh_p = jnp.pad(w_hh.astype(f32), ((0, HP - H), (0, HP - H)))
    b_p = jnp.pad((b_ih + b_hh).astype(f32).reshape(1, -1), ((0, 0), (0, HP - H)))
    wfc_p = jnp.pad(w_fc.astype(f32), ((0, HP - H), (0, OP - O3)))
    bfc_p = jnp.pad(b_fc.astype(f32).reshape(1, -1), ((0, 0), (0, OP - O3)))

    @jax.jit
    def forward(x):
        B, T, Ix = x.shape
        assert Ix == I and T >= 1
        BP = max(8, _round_up(B, 8))  # sublane-dense padded batch

        # Per-call work: pad batch/features, go time-major with contiguous
        # per-step rows (T*BP, IP). Fuses with the pallas_call under jit.
        xp = jnp.pad(x.astype(f32), ((0, BP - B), (0, 0), (0, IP - I)))
        xp = jnp.transpose(xp, (1, 0, 2)).reshape(T * BP, IP)

        def kernel(x_ref, wih_ref, whh_ref, b_ref, wfc_ref, bfc_ref,
                   out_ref, pre_ref):
            # Hoisted input projection: one MXU pass over all timesteps, parked
            # in VMEM scratch so only one (8,128) vreg/step is live in the loop.
            pre_ref[...] = (jnp.dot(x_ref[...], wih_ref[...],
                                    preferred_element_type=jnp.float32)
                            + b_ref[...])                         # (T*BP, HP)
            whh = whh_ref[...]                 # loop-invariant MXU RHS (HP, HP)
            h = jnp.zeros((BP, HP), jnp.float32)   # h0 = 0, kept in vregs
            # TODO(synk): if Mosaic bundle dumps show the 128x128 W_hh being
            # re-pushed to the MXU every step, drive it explicitly with
            # pltpu.matmul_push_rhs (once) + pltpu.matmul_acc_lhs/matmul_pop per
            # step to keep the RHS stationary (and use the MRB accumulate on v7x).
            for t in range(T):  # T small & static -> fully unrolled, static slices
                pre_t = pre_ref[t * BP:(t + 1) * BP, :]
                h = jnp.tanh(pre_t + jnp.dot(h, whh,
                                             preferred_element_type=jnp.float32))
            # FC on the last hidden state only; lane-dense (BP, OP) store.
            # wfc_ref is only touched after the recurrence to limit vreg pressure.
            out_ref[...] = (jnp.dot(h, wfc_ref[...],
                                    preferred_element_type=jnp.float32)
                            + bfc_ref[...])

        out_p = pl.pallas_call(
            kernel,
            out_shape=jax.ShapeDtypeStruct((BP, OP), jnp.float32),
            grid_spec=pltpu.PrefetchScalarGridSpec(
                num_scalar_prefetch=0,
                grid=(1,),  # single invocation; time loop lives inside the kernel
                in_specs=[
                    pl.BlockSpec((T * BP, IP), lambda i: (0, 0)),  # all timesteps
                    pl.BlockSpec((IP, HP), lambda i: (0, 0)),      # W_ih^T
                    pl.BlockSpec((HP, HP), lambda i: (0, 0)),      # W_hh^T
                    pl.BlockSpec((1, HP), lambda i: (0, 0)),       # b_ih + b_hh
                    pl.BlockSpec((HP, OP), lambda i: (0, 0)),      # W_fc^T
                    pl.BlockSpec((1, OP), lambda i: (0, 0)),       # b_fc
                ],
                out_specs=pl.BlockSpec((BP, OP), lambda i: (0, 0)),
                scratch_shapes=[pltpu.VMEM((T * BP, HP), jnp.float32)],  # pre_all
            ),
            compiler_params=pltpu.CompilerParams(
                dimension_semantics=("arbitrary",)),
        )(xp, wih_p, whh_p, b_p, wfc_p, bfc_p)

        # Padded batch rows picked up the broadcast bias through the recurrence;
        # they are garbage by design and must be sliced off here (never read them).
        return out_p[:B, :O3].reshape(-1, 3, 2)  # matches out.view(-1, 3, 2)

    return forward


def reference_forward(x, w_ih, w_hh, b_ih, b_hh, w_fc, b_fc):
    B, T, I = x.shape
    H = w_ih.shape[1]
    h = jnp.zeros((B, H), jnp.float32)
    for t in range(T):
        h = jnp.tanh(x[:, t, :] @ w_ih + h @ w_hh + b_ih + b_hh)
    out = h @ w_fc + b_fc
    return out.reshape(-1, 3, 2)


if __name__ == "__main__":
    # Small shapes implied by the module: batch=2, seq=8, input=16, hidden=32, output_size=2
    B, T, I, H, OUT = 2, 8, 16, 32, 2
    O3 = OUT * 3

    key = jax.random.PRNGKey(0)
    ks = jax.random.split(key, 8)
    x = jax.random.normal(ks[0], (B, T, I), jnp.float32)

    scale = 1.0 / jnp.sqrt(H)
    w_ih = jax.random.uniform(ks[1], (I, H), jnp.float32, -scale, scale)
    w_hh = jax.random.uniform(ks[2], (H, H), jnp.float32, -scale, scale)
    b_ih = jax.random.uniform(ks[3], (1, H), jnp.float32, -scale, scale)
    b_hh = jax.random.uniform(ks[4], (1, H), jnp.float32, -scale, scale)
    w_fc = jax.random.uniform(ks[5], (H, O3), jnp.float32, -scale, scale)
    b_fc = jax.random.uniform(ks[6], (1, O3), jnp.float32, -scale, scale)

    forward = make_rnn_forward(w_ih, w_hh, b_ih, b_hh, w_fc, b_fc)  # params padded once
    out = forward(x)
    out = jax.block_until_ready(out)

    ref = reference_forward(x, w_ih, w_hh, b_ih, b_hh, w_fc, b_fc)
    assert out.shape == (B, 3, 2), out.shape
    assert jnp.allclose(out, ref, atol=1e-5, rtol=1e-5)

    print("KERNEL_OK")
</pallas_src>

<mosaic_0001>
module attributes {stable_mosaic.version = 11 : i64} {
  func.func @kernel(%arg0: i32, %arg1: memref<64x128xf32, #tpu.memory_space<vmem>>, %arg2: memref<128x128xf32, #tpu.memory_space<vmem>>, %arg3: memref<128x128xf32, #tpu.memory_space<vmem>>, %arg4: memref<1x128xf32, #tpu.memory_space<vmem>>, %arg5: memref<128x128xf32, #tpu.memory_space<vmem>>, %arg6: memref<1x128xf32, #tpu.memory_space<vmem>>, %arg7: memref<8x128xf32, #tpu.memory_space<vmem>>, %arg8: memref<64x128xf32, #tpu.memory_space<vmem>>) attributes {dimension_semantics = [#tpu.dimension_semantics<arbitrary>], iteration_bounds = array<i64: 1>, scalar_prefetch = 0 : i64, scratch_operands = 1 : i64, tpu.core_type = #tpu.core_type<tc>, window_params = [{pipeline_mode = #tpu.pipeline_mode<synchronous>, transform_indices = @transform_0, window_bounds = array<i64: 64, 128>}, {pipeline_mode = #tpu.pipeline_mode<synchronous>, transform_indices = @transform_1, window_bounds = array<i64: 128, 128>}, {pipeline_mode = #tpu.pipeline_mode<synchronous>, transform_indices = @transform_2, window_bounds = array<i64: 128, 128>}, {pipeline_mode = #tpu.pipeline_mode<synchronous>, transform_indices = @transform_3, window_bounds = array<i64: 1, 128>}, {pipeline_mode = #tpu.pipeline_mode<synchronous>, transform_indices = @transform_4, window_bounds = array<i64: 128, 128>}, {pipeline_mode = #tpu.pipeline_mode<synchronous>, transform_indices = @transform_5, window_bounds = array<i64: 1, 128>}, {pipeline_mode = #tpu.pipeline_mode<synchronous>, transform_indices = @transform_6, window_bounds = array<i64: 8, 128>}]} {
    %c0 = arith.constant 0 : index
    %c0_0 = arith.constant 0 : index
    %0 = vector.load %arg1[%c0, %c0_0] : memref<64x128xf32, #tpu.memory_space<vmem>>, vector<64x128xf32>
    %c0_1 = arith.constant 0 : index
    %c0_2 = arith.constant 0 : index
    %1 = vector.load %arg2[%c0_1, %c0_2] : memref<128x128xf32, #tpu.memory_space<vmem>>, vector<128x128xf32>
    %cst = arith.constant dense<0.000000e+00> : vector<64x128xf32>
    %2 = tpu.matmul %0, %1, %cst {dimension_numbers = #tpu.dot_dimension_numbers<[1], [0], [0], [1], [0, 0, 1, 1], [], []>} : vector<64x128xf32>, vector<128x128xf32>, vector<64x128xf32> -> vector<64x128xf32>
    %c0_3 = arith.constant 0 : index
    %c0_4 = arith.constant 0 : index
    %3 = vector.load %arg4[%c0_3, %c0_4] : memref<1x128xf32, #tpu.memory_space<vmem>>, vector<1x128xf32>
    %4 = vector.broadcast %3 : vector<1x128xf32> to vector<64x128xf32>
    %5 = arith.addf %2, %4 : vector<64x128xf32>
    %c0_5 = arith.constant 0 : index
    %c0_6 = arith.constant 0 : index
    %6 = vector.load %arg8[%c0_5, %c0_6] : memref<64x128xf32, #tpu.memory_space<vmem>>, vector<64x128xf32>
    tpu.vector_store %arg8[%c0_5, %c0_6], %5 {strides = array<i32>} : memref<64x128xf32, #tpu.memory_space<vmem>>, vector<64x128xf32>,
    %c0_7 = arith.constant 0 : index
    %c0_8 = arith.constant 0 : index
    %7 = vector.load %arg3[%c0_7, %c0_8] : memref<128x128xf32, #tpu.memory_space<vmem>>, vector<128x128xf32>
    %cst_9 = arith.constant 0.000000e+00 : f32
    %8 = vector.broadcast %cst_9 : f32 to vector<8x128xf32>
    %c0_10 = arith.constant 0 : index
    %c0_11 = arith.constant 0 : index
    %9 = vector.load %arg8[%c0_10, %c0_11] : memref<64x128xf32, #tpu.memory_space<vmem>>, vector<8x128xf32>
    %cst_12 = arith.constant dense<0.000000e+00> : vector<8x128xf32>
    %10 = tpu.matmul %8, %7, %cst_12 {dimension_numbers = #tpu.dot_dimension_numbers<[1], [0], [0], [1], [0, 0, 1, 1], [], []>} : vector<8x128xf32>, vector<128x128xf32>, vector<8x128xf32> -> vector<8x128xf32>
    %11 = arith.addf %9, %10 : vector<8x128xf32>
    %12 = math.tanh %11 : vector<8x128xf32>
    %c8 = arith.constant 8 : index
    %c0_13 = arith.constant 0 : index
    %13 = vector.load %arg8[%c8, %c0_13] : memref<64x128xf32, #tpu.memory_space<vmem>>, vector<8x128xf32>
    %cst_14 = arith.constant dense<0.000000e+00> : vector<8x128xf32>
    %14 = tpu.matmul %12, %7, %cst_14 {dimension_numbers = #tpu.dot_dimension_numbers<[1], [0], [0], [1], [0, 0, 1, 1], [], []>} : vector<8x128xf32>, vector<128x128xf32>, vector<8x128xf32> -> vector<8x128xf32>
    %15 = arith.addf %13, %14 : vector<8x128xf32>
    %16 = math.tanh %15 : vector<8x128xf32>
    %c16 = arith.constant 16 : index
    %c0_15 = arith.constant 0 : index
    %17 = vector.load %arg8[%c16, %c0_15] : memref<64x128xf32, #tpu.memory_space<vmem>>, vector<8x128xf32>
    %cst_16 = arith.constant dense<0.000000e+00> : vector<8x128xf32>
    %18 = tpu.matmul %16, %7, %cst_16 {dimension_numbers = #tpu.dot_dimension_numbers<[1], [0], [0], [1], [0, 0, 1, 1], [], []>} : vector<8x128xf32>, vector<128x128xf32>, vector<8x128xf32> -> vector<8x128xf32>
    %19 = arith.addf %17, %18 : vector<8x128xf32>
    %20 = math.tanh %19 : vector<8x128xf32>
    %c24 = arith.constant 24 : index
    %c0_17 = arith.constant 0 : index
    %21 = vector.load %arg8[%c24, %c0_17] : memref<64x128xf32, #tpu.memory_space<vmem>>, vector<8x128xf32>
    %cst_18 = arith.constant dense<0.000000e+00> : vector<8x128xf32>
    %22 = tpu.matmul %20, %7, %cst_18 {dimension_numbers = #tpu.dot_dimension_numbers<[1], [0], [0], [1], [0, 0, 1, 1], [], []>} : vector<8x128xf32>, vector<128x128xf32>, vector<8x128xf32> -> vector<8x128xf32>
    %23 = arith.addf %21, %22 : vector<8x128xf32>
    %24 = math.tanh %23 : vector<8x128xf32>
    %c32 = arith.constant 32 : index
    %c0_19 = arith.constant 0 : index
    %25 = vector.load %arg8[%c32, %c0_19] : memref<64x128xf32, #tpu.memory_space<vmem>>, vector<8x128xf32>
    %cst_20 = arith.constant dense<0.000000e+00> : vector<8x128xf32>
    %26 = tpu.matmul %24, %7, %cst_20 {dimension_numbers = #tpu.dot_dimension_numbers<[1], [0], [0], [1], [0, 0, 1, 1], [], []>} : vector<8x128xf32>, vector<128x128xf32>, vector<8x128xf32> -> vector<8x128xf32>
    %27 = arith.addf %25, %26 : vector<8x128xf32>
    %28 = math.tanh %27 : vector<8x128xf32>
    %c40 = arith.constant 40 : index
    %c0_21 = arith.constant 0 : index
    %29 = vector.load %arg8[%c40, %c0_21] : memref<64x128xf32, #tpu.memory_space<vmem>>, vector<8x128xf32>
    %cst_22 = arith.constant dense<0.000000e+00> : vector<8x128xf32>
    %30 = tpu.matmul %28, %7, %cst_22 {dimension_numbers = #tpu.dot_dimension_numbers<[1], [0], [0], [1], [0, 0, 1, 1], [], []>} : vector<8x128xf32>, vector<128x128xf32>, vector<8x128xf32> -> vector<8x128xf32>
    %31 = arith.addf %29, %30 : vector<8x128xf32>
    %32 = math.tanh %31 : vector<8x128xf32>
    %c48 = arith.constant 48 : index
    %c0_23 = arith.constant 0 : index
    %33 = vector.load %arg8[%c48, %c0_23] : memref<64x128xf32, #tpu.memory_space<vmem>>, vector<8x128xf32>
    %cst_24 = arith.constant dense<0.000000e+00> : vector<8x128xf32>
    %34 = tpu.matmul %32, %7, %cst_24 {dimension_numbers = #tpu.dot_dimension_numbers<[1], [0], [0], [1], [0, 0, 1, 1], [], []>} : vector<8x128xf32>, vector<128x128xf32>, vector<8x128xf32> -> vector<8x128xf32>
    %35 = arith.addf %33, %34 : vector<8x128xf32>
    %36 = math.tanh %35 : vector<8x128xf32>
    %c56 = arith.constant 56 : index
    %c0_25 = arith.constant 0 : index
    %37 = vector.load %arg8[%c56, %c0_25] : memref<64x128xf32, #tpu.memory_space<vmem>>, vector<8x128xf32>
    %cst_26 = arith.constant dense<0.000000e+00> : vector<8x128xf32>
    %38 = tpu.matmul %36, %7, %cst_26 {dimension_numbers = #tpu.dot_dimension_numbers<[1], [0], [0], [1], [0, 0, 1, 1], [], []>} : vector<8x128xf32>, vector<128x128xf32>, vector<8x128xf32> -> vector<8x128xf32>
    %39 = arith.addf %37, %38 : vector<8x128xf32>
    %40 = math.tanh %39 : vector<8x128xf32>
    %c0_27 = arith.constant 0 : index
    %c0_28 = arith.constant 0 : index
    %41 = vector.load %arg5[%c0_27, %c0_28] : memref<128x128xf32, #tpu.memory_space<vmem>>, vector<128x128xf32>
    %cst_29 = arith.constant dense<0.000000e+00> : vector<8x128xf32>
    %42 = tpu.matmul %40, %41, %cst_29 {dimension_numbers = #tpu.dot_dimension_numbers<[1], [0], [0], [1], [0, 0, 1, 1], [], []>} : vector<8x128xf32>, vector<128x128xf32>, vector<8x128xf32> -> vector<8x128xf32>
    %c0_30 = arith.constant 0 : index
    %c0_31 = arith.constant 0 : index
    %43 = vector.load %arg6[%c0_30, %c0_31] : memref<1x128xf32, #tpu.memory_space<vmem>>, vector<1x128xf32>
    %44 = vector.broadcast %43 : vector<1x128xf32> to vector<8x128xf32>
    %45 = arith.addf %42, %44 : vector<8x128xf32>
    %c0_32 = arith.constant 0 : index
    %c0_33 = arith.constant 0 : index
    %46 = vector.load %arg7[%c0_32, %c0_33] : memref<8x128xf32, #tpu.memory_space<vmem>>, vector<8x128xf32>
    tpu.vector_store %arg7[%c0_32, %c0_33], %45 {strides = array<i32>} : memref<8x128xf32, #tpu.memory_space<vmem>>, vector<8x128xf32>,
    return
  }
  func.func @transform_0(%arg0: i32) -> (i32, i32) {
    %c0_i32 = arith.constant 0 : i32
    %c0_i32_0 = arith.constant 0 : i32
    %c0_i32_1 = arith.constant 0 : i32
    return %c0_i32, %c0_i32_0 : i32, i32
  }
  func.func @transform_1(%arg0: i32) -> (i32, i32) {
    %c0_i32 = arith.constant 0 : i32
    %c0_i32_0 = arith.constant 0 : i32
    %c0_i32_1 = arith.constant 0 : i32
    return %c0_i32, %c0_i32_0 : i32, i32
  }
  func.func @transform_2(%arg0: i32) -> (i32, i32) {
    %c0_i32 = arith.constant 0 : i32
    %c0_i32_0 = arith.constant 0 : i32
    %c0_i32_1 = arith.constant 0 : i32
    return %c0_i32, %c0_i32_0 : i32, i32
  }
  func.func @transform_3(%arg0: i32) -> (i32, i32) {
    %c0_i32 = arith.constant 0 : i32
    %c0_i32_0 = arith.constant 0 : i32
    %c0_i32_1 = arith.constant 0 : i32
    return %c0_i32, %c0_i32_0 : i32, i32
  }
  func.func @transform_4(%arg0: i32) -> (i32, i32) {
    %c0_i32 = arith.constant 0 : i32
    %c0_i32_0 = arith.constant 0 : i32
    %c0_i32_1 = arith.constant 0 : i32
    return %c0_i32, %c0_i32_0 : i32, i32
  }
  func.func @transform_5(%arg0: i32) -> (i32, i32) {
    %c0_i32 = arith.constant 0 : i32
    %c0_i32_0 = arith.constant 0 : i32
    %c0_i32_1 = arith.constant 0 : i32
    return %c0_i32, %c0_i32_0 : i32, i32
  }
  func.func @transform_6(%arg0: i32) -> (i32, i32) {
    %c0_i32 = arith.constant 0 : i32
    %c0_i32_0 = arith.constant 0 : i32
    %c0_i32_1 = arith.constant 0 : i32
    return %c0_i32, %c0_i32_0 : i32, i32
  }
}

</mosaic_0001>

<bundles_post_ra>
// kernel: forward.1
= control target key start
LH: loop header
LB: loop body
LE: loop exit
PB: predicated region body
PF: predicated region fallthrough
CT: control target
= control target key end

     0   :  { %11 = vsyncpa [#allocation4], 0  ;;  %s2092_s0 = inlined_call_operand.vmem [shape: f32[64,128], index: 0, kind: input, shape index: {}]   ;;  %s2093_s1 = inlined_call_operand.hbm [shape: f32[128,128], index: 1, kind: input, shape index: {}]   ;;  %s2094_s2 = inlined_call_operand.hbm [shape: f32[128,128], index: 2, kind: input, shape index: {}]   ;;  %s2095_s3 = inlined_call_operand.vmem [shape: f32[1,128], index: 3, kind: input, shape index: {}]   ;;  %s2096_s4 = inlined_call_operand.vmem [shape: f32[128,128], index: 4, kind: input, shape index: {}]   ;;  %s2097_s5 = inlined_call_operand.vmem [shape: f32[1,128], index: 5, kind: input, shape index: {}]   ;;  %s2098_s6 = inlined_call_operand.vmem [shape: f32[8,128], index: 6, kind: output, shape index: {}]  }
   0x1   :  { %12 = vsyncpa [#allocation6], 0  ;;  %s1752_s21 = smov [#allocation3]   ;;  %s1704_s25 = scalar_lea.hbm %s2093_s1, 2048 }
   0x2   :  { %s20_s22 = sshll.u32 %s1752_s21, 4  ;;  %p1705_p0 = scmp.ne.s32.totalorder %s2093_s1, %s1704_s25  ;;  %s21_s22 = int_to_ptr.vmem [resolvable:$true] %s20_s22 }
   0x3   :  { %p1708_p1 = scmp.lt.u32.totalorder %s1704_s25, %s2093_s1 }
   0x5   :  { %p1710_p2 = pnand %p1708_p1, %p1705_p0 }
   0x7   :  { %1713 = shalt.err (!%p1710_p2)
}
   0x8   :  { %s1714_s30 = scalar_lea.vmem %s21_s22, 2048  ;;  %p1719_p4 = scmp.lt.s32.totalorder %s21_s22, %s21_s22 }
   0x9   :  { %p1715_p3 = scmp.ne.s32.totalorder %s21_s22, %s1714_s30  ;;  %p1720_p5 = scmp.lt.s32.totalorder %s1714_s30, %s1714_s30 }
   0xb   :  { %p1721_p6 = por %p1720_p5, %p1719_p4 }
   0xd   :  { %p1722_p7 = pnand %p1721_p6, %p1715_p3 }
   0xf   :  { %1725 = shalt.err (!%p1722_p7)
}
  0x10   :  { %s1753_s7 = smov 128   ;;  %s1754_s8 = smov 8  }
  0x11   :  { %26 = dma.hbm_to_vmem [thread:$0]  %s2093_s1, 2048, %s21_s22, [#allocation4], %s1753_s7, %s1753_s7, %s1754_s8  }
  0x12   :  { %s1755_s11 = smov [#allocation5]   ;;  %s1726_s15 = scalar_lea.hbm %s2094_s2, 2048 }
  0x13   :  { %s32_s12 = sshll.u32 %s1755_s11, 4  ;;  %p1727_p8 = scmp.ne.s32.totalorder %s2094_s2, %s1726_s15  ;;  %s33_s12 = int_to_ptr.vmem [resolvable:$true] %s32_s12 }
  0x14   :  { %p1730_p9 = scmp.lt.u32.totalorder %s1726_s15, %s2094_s2 }
  0x16   :  { %p1732_p10 = pnand %p1730_p9, %p1727_p8 }
  0x18   :  { %1735 = shalt.err (!%p1732_p10)
}
  0x19   :  { %s1736_s20 = scalar_lea.vmem %s33_s12, 2048  ;;  %p1741_p12 = scmp.lt.s32.totalorder %s33_s12, %s33_s12 }
  0x1a   :  { %p1737_p11 = scmp.ne.s32.totalorder %s33_s12, %s1736_s20  ;;  %p1742_p13 = scmp.lt.s32.totalorder %s1736_s20, %s1736_s20 }
  0x1c   :  { %p1743_p0 = por %p1742_p13, %p1741_p12 }
  0x1e   :  { %p1744_p1 = pnand %p1743_p0, %p1737_p11 }
  0x20   :  { %1747 = shalt.err (!%p1744_p1)
}
  0x21   :  { %38 = dma.hbm_to_vmem [thread:$0]  %s2094_s2, 2048, %s33_s12, [#allocation6], %s1753_s7, %s1753_s7, %s1754_s8  }
  0x22   :  { %1748 = dma.done.wait [#allocation4], 2048  }
  0x23   :  { %1749 = vsyncadd [#allocation4], 4294965248 }
  0x24   :  { %1750 = dma.done.wait [#allocation6], 2048  }
  0x25   :  { %1751 = vsyncadd [#allocation6], 4294965248  ;;  %v1756_v0 = vmov 0.0|0.0   ;;  %vm1757_vm0 = vmmov 0   ;;  %v1758_v1 = vmov 0.0   ;;  %v59_v2 = vld [vmem:[#allocation3] sm:$0xff] }
  0x26   :  { %1465 = vmatprep.subr.bf16.mxu1 %v1756_v0  ;;  %1150 = vmatprep.mubr.msk.f32.mxu1 %vm1757_vm0, %v1758_v1  ;;  %v60_v3 = vld [vmem:[#allocation3 + $0x8] sm:$0xff]  ;;  %v195_v4 = vld [vmem:[#allocation5] sm:$0xff]  ;;  %v61_v7 = vld [vmem:[#allocation3 + $0x10] sm:$0xff] }
  0x27   :  { %v1433_v5 = vpack.c.bf16 %v60_v3, %v59_v2  ;;  %v196_v6 = vld [vmem:[#allocation5 + $0x8] sm:$0xff]  ;;  %v62_v8 = vld [vmem:[#allocation3 + $0x18] sm:$0xff]  ;;  %v197_v11 = vld [vmem:[#allocation5 + $0x10] sm:$0xff] }
  0x28   :  { %v1821_v9 = vpack.c.bf16 %v196_v6, %v195_v4  ;;  %v1437_v10 = vpack.c.bf16 %v62_v8, %v61_v7  ;;  %v198_v12 = vld [vmem:[#allocation5 + $0x18] sm:$0xff]  ;;  %v63_v13 = vld [vmem:[#allocation3 + $0x20] sm:$0xff]  ;;  %v64_v14 = vld [vmem:[#allocation3 + $0x28] sm:$0xff] }
  0x29   :  { %1434 = vmatprep.subr.bf16.mxu0 %v1433_v5  ;;  %v1824_v15 = vpack.c.bf16 %v198_v12, %v197_v11  ;;  %v1441_v16 = vpack.c.bf16 %v64_v14, %v63_v13  ;;  %v199_v17 = vld [vmem:[#allocation5 + $0x20] sm:$0xff]  ;;  %v200_v18 = vld [vmem:[#allocation5 + $0x28] sm:$0xff]  ;;  %v65_v19 = vld [vmem:[#allocation3 + $0x30] sm:$0xff] }
  0x2a   :  { %1436 = vmatpush3.bf16.msra.mxu0 %v1433_v5  ;;  %1467 = vmatpush3.bf16.msra.mxu1 %v1821_v9  ;;  %v66_v20 = vld [vmem:[#allocation3 + $0x38] sm:$0xff]  ;;  %v1828_v21 = vpack.c.bf16 %v200_v18, %v199_v17  ;;  %v201_v23 = vld [vmem:[#allocation5 + $0x30] sm:$0xff]  ;;  %v67_v25 = vld [vmem:[#allocation3 + $0x40] sm:$0xff] }
  0x2b   :  { %1438 = vmatprep.subr.bf16.mxu0 %v1437_v10  ;;  %1468 = vmatprep.subr.bf16.mxu1 %v1756_v0  ;;  %v1445_v22 = vpack.c.bf16 %v66_v20, %v65_v19  ;;  %v202_v24 = vld [vmem:[#allocation5 + $0x38] sm:$0xff]  ;;  %v68_v26 = vld [vmem:[#allocation3 + $0x48] sm:$0xff]  ;;  %v51_v27 = vld [vmem:[%s2092_s0] sm:$0xff] }
  0x2c   :  { %1106 = vmatprep.mubr.f32.mxu0 %v51_v27  ;;  %v1835_v28 = vpack.c.bf16 %v202_v24, %v201_v23  ;;  %v1449_v29 = vpack.c.bf16 %v68_v26, %v67_v25  ;;  %v203_v30 = vld [vmem:[#allocation5 + $0x40] sm:$0xff]  ;;  %v204_v31 = vld [vmem:[#allocation5 + $0x48] sm:$0xff]  ;;  %v69_v32 = vld [vmem:[#allocation3 + $0x50] sm:$0xff] }
  0x2d   :  { %v70_v33 = vld [vmem:[#allocation3 + $0x58] sm:$0xff]  ;;  %v1839_v34 = vpack.c.bf16 %v204_v31, %v203_v30  ;;  %v205_v36 = vld [vmem:[#allocation5 + $0x50] sm:$0xff]  ;;  %v71_v38 = vld [vmem:[#allocation3 + $0x60] sm:$0xff] }
  0x2e   :  { %1440 = vmatpush3.bf16.msra.mxu0 %v1437_v10  ;;  %1470 = vmatpush3.bf16.msra.mxu1 %v1824_v15  ;;  %v1453_v35 = vpack.c.bf16 %v70_v33, %v69_v32  ;;  %v206_v37 = vld [vmem:[#allocation5 + $0x58] sm:$0xff]  ;;  %v72_v39 = vld [vmem:[#allocation3 + $0x68] sm:$0xff]  ;;  %v207_v42 = vld [vmem:[#allocation5 + $0x60] sm:$0xff] }
  0x2f   :  { %1442 = vmatprep.subr.bf16.mxu0 %v1441_v16  ;;  %1471 = vmatprep.subr.bf16.mxu1 %v1756_v0  ;;  %v1843_v40 = vpack.c.bf16 %v206_v37, %v205_v36  ;;  %v1457_v41 = vpack.c.bf16 %v72_v39, %v71_v38  ;;  %v208_v43 = vld [vmem:[#allocation5 + $0x68] sm:$0xff]  ;;  %v73_v44 = vld [vmem:[#allocation3 + $0x70] sm:$0xff]  ;;  %v74_v45 = vld [vmem:[#allocation3 + $0x78] sm:$0xff] }
  0x30   :  { %v1847_v46 = vpack.c.bf16 %v208_v43, %v207_v42  ;;  %v1461_v47 = vpack.c.bf16 %v74_v45, %v73_v44  ;;  %v209_v48 = vld [vmem:[#allocation5 + $0x70] sm:$0xff]  ;;  %v210_v49 = vld [vmem:[#allocation5 + $0x78] sm:$0xff]  ;;  %v52_v51 = vld [vmem:[%s2092_s0 + $0x8] sm:$0xff] }
  0x31   :  { %v1851_v50 = vpack.c.bf16 %v210_v49, %v209_v48  ;;  %v53_v52 = vld [vmem:[%s2092_s0 + $0x10] sm:$0xff]  ;;  %v54_v53 = vld [vmem:[%s2092_s0 + $0x18] sm:$0xff]  ;;  %v55_v54 = vld [vmem:[%s2092_s0 + $0x20] sm:$0xff] }
  0x32   :  { %1444 = vmatpush3.bf16.msra.mxu0 %v1441_v16  ;;  %1473 = vmatpush3.bf16.msra.mxu1 %v1828_v21  ;;  %v56_v55 = vld [vmem:[%s2092_s0 + $0x28] sm:$0xff]  ;;  %v57_v56 = vld [vmem:[%s2092_s0 + $0x30] sm:$0xff]  ;;  %v58_v57 = vld [vmem:[%s2092_s0 + $0x38] sm:$0xff] }
  0x33   :  { %1446 = vmatprep.subr.bf16.mxu0 %v1445_v22  ;;  %1474 = vmatprep.subr.bf16.mxu1 %v1756_v0  ;;  %v1918_v58 = vld [vmem:[%s2095_s3] ss:$0 sm:$0xff]  ;;  %v796_v36 = vld [vmem:[%s2096_s4 + $0x8] sm:$0xff]  ;;  %v797_v37 = vld [vmem:[%s2096_s4 + $0x10] sm:$0xff] }
  0x34   :  { %v798_v39 = vld [vmem:[%s2096_s4 + $0x18] sm:$0xff]  ;;  %v801_v43 = vld [vmem:[%s2096_s4 + $0x30] sm:$0xff] }
  0x35   :  { %v802_v44 = vld [vmem:[%s2096_s4 + $0x38] sm:$0xff] }
  0x36   :  { %1448 = vmatpush3.bf16.msra.mxu0 %v1445_v22  ;;  %1476 = vmatpush3.bf16.msra.mxu1 %v1835_v28  ;;  %v1667_v45 = vpack.c.bf16 %v802_v44, %v801_v43 }
  0x37   :  { %1450 = vmatprep.subr.bf16.mxu0 %v1449_v29  ;;  %1477 = vmatprep.subr.bf16.mxu1 %v1756_v0 }
  0x3a   :  { %1452 = vmatpush3.bf16.msra.mxu0 %v1449_v29  ;;  %1479 = vmatpush3.bf16.msra.mxu1 %v1839_v34 }
  0x3b   :  { %1454 = vmatprep.subr.bf16.mxu0 %v1453_v35  ;;  %1480 = vmatprep.subr.bf16.mxu1 %v1756_v0 }
  0x3e   :  { %1456 = vmatpush3.bf16.msra.mxu0 %v1453_v35  ;;  %1482 = vmatpush3.bf16.msra.mxu1 %v1843_v40  ;;  %v795_v35 = vld [vmem:[%s2096_s4] sm:$0xff] }
  0x3f   :  { %1458 = vmatprep.subr.bf16.mxu0 %v1457_v41  ;;  %1483 = vmatprep.subr.bf16.mxu1 %v1756_v0  ;;  %v1658_v38 = vpack.c.bf16 %v796_v36, %v795_v35 }
  0x42   :  { %1460 = vmatpush3.bf16.msra.mxu0 %v1457_v41  ;;  %1485 = vmatpush3.bf16.msra.mxu1 %v1847_v46  ;;  %v800_v41 = vld [vmem:[%s2096_s4 + $0x28] sm:$0xff] }
  0x43   :  { %1462 = vmatprep.subr.bf16.mxu0 %v1461_v47  ;;  %1486 = vmatprep.subr.bf16.mxu1 %v1756_v0 }
  0x46   :  { %1464 = vmatpush3.bf16.msra.mxu0 %v1461_v47  ;;  %1488 = vmatpush3.bf16.msra.mxu1 %v1851_v50  ;;  %v804_v47 = vld [vmem:[%s2096_s4 + $0x48] sm:$0xff] }
  0x47   :  { %1489 = vmatprep.subr.bf16.mxu0 %v1756_v0  ;;  %1513 = vmatprep.subr.bf16.mxu1 %v1756_v0 }
  0x49   :  { %1107 = vmatmul.mubr.f32.vlgmr.msra.gmra.mrb[0].mxu0 %v52_v51  ;;  %1151 = vmatmul.mubr.f32.vlgmr.msra.gmra.mrb[0].mxu1 %v1758_v1 }
  0x4a   :  { %1491 = vmatpush3.bf16.msra.mxu0 %v1821_v9  ;;  %1515 = vmatpush3.bf16.msra.mxu1 %v1821_v9 }
  0x4b   :  { %1492 = vmatprep.subr.bf16.mxu0 %v1756_v0  ;;  %1516 = vmatprep.subr.bf16.mxu1 %v1756_v0 }
  0x4c   :  { %1220 = vmatprep.mubr.msk.f32.mxu1 %vm1757_vm0, %v1758_v1  ;;  %1109 = vmatprep.mubr.f32.mxu0 %v53_v52 }
  0x4d   :  { %1110 = vmatmul.mubr.f32.gmra.mrb[2].mxu0 %v54_v53 }
  0x4e   :  { %1494 = vmatpush3.bf16.msra.mxu0 %v1824_v15  ;;  %1518 = vmatpush3.bf16.msra.mxu1 %v1824_v15 }
  0x4f   :  { %1495 = vmatprep.subr.bf16.mxu0 %v1756_v0  ;;  %1519 = vmatprep.subr.bf16.mxu1 %v1756_v0 }
  0x50   :  { %1112 = vmatprep.mubr.f32.mxu0 %v55_v54  ;;  %v805_v54 = vld [vmem:[%s2096_s4 + $0x50] sm:$0xff] }
  0x51   :  { %1113 = vmatmul.mubr.f32.gmra.mrb[4].mxu0 %v56_v55  ;;  %v806_v55 = vld [vmem:[%s2096_s4 + $0x58] sm:$0xff] }
  0x52   :  { %1497 = vmatpush3.bf16.msra.mxu0 %v1828_v21  ;;  %1521 = vmatpush3.bf16.msra.mxu1 %v1828_v21 }
  0x53   :  { %1498 = vmatprep.subr.bf16.mxu0 %v1756_v0  ;;  %1522 = vmatprep.subr.bf16.mxu1 %v1756_v0 }
  0x54   :  { %1115 = vmatprep.mubr.f32.mxu0 %v57_v56  ;;  %v1673_v56 = vpack.c.bf16 %v806_v55, %v805_v54 }
  0x55   :  { %1116 = vmatmul.mubr.f32.gmra.mrb[6].mxu0 %v58_v57  ;;  %v807_v57 = vld [vmem:[%s2096_s4 + $0x60] sm:$0xff] }
  0x56   :  { %1500 = vmatpush3.bf16.msra.mxu0 %v1835_v28  ;;  %1524 = vmatpush3.bf16.msra.mxu1 %v1835_v28 }
  0x57   :  { %1501 = vmatprep.subr.bf16.mxu0 %v1756_v0  ;;  %1525 = vmatprep.subr.bf16.mxu1 %v1756_v0 }
  0x58   :  { %1185 = vmatprep.mubr.msk.f32.mxu0 %vm1757_vm0, %v1758_v1 }
  0x5a   :  { %1503 = vmatpush3.bf16.msra.mxu0 %v1839_v34  ;;  %1527 = vmatpush3.bf16.msra.mxu1 %v1839_v34 }
  0x5b   :  { %1504 = vmatprep.subr.bf16.mxu0 %v1756_v0  ;;  %1528 = vmatprep.subr.bf16.mxu1 %v1756_v0 }
  0x5e   :  { %1506 = vmatpush3.bf16.msra.mxu0 %v1843_v40  ;;  %1530 = vmatpush3.bf16.msra.mxu1 %v1843_v40 }
  0x5f   :  { %1507 = vmatprep.subr.bf16.mxu0 %v1756_v0  ;;  %1531 = vmatprep.subr.bf16.mxu1 %v1756_v0 }
  0x62   :  { %1509 = vmatpush3.bf16.msra.mxu0 %v1847_v46  ;;  %1533 = vmatpush3.bf16.msra.mxu1 %v1847_v46 }
  0x63   :  { %1510 = vmatprep.subr.bf16.mxu0 %v1756_v0  ;;  %1534 = vmatprep.subr.bf16.mxu1 %v1756_v0 }
  0x66   :  { %1512 = vmatpush3.bf16.msra.mxu0 %v1851_v50  ;;  %1536 = vmatpush3.bf16.msra.mxu1 %v1851_v50 }
  0x67   :  { %1537 = vmatprep.subr.bf16.mxu0 %v1756_v0  ;;  %1561 = vmatprep.subr.bf16.mxu1 %v1756_v0 }
 0x11c   :  { %v1108_v59 = vpop.f32.mrb[0].mxu0  ;;  %v278_v60 = vpop.f32.mrb[0].mxu1 }
 0x11d   :  { %v148_v61 = vpop.f32.mrb[1].mxu0  ;;  %v1152_v62 = vpop.f32.mrb[1].mxu1  ;;  %v154_v11 = vadd.f32 %v1108_v59, %v1918_v58  ;;  %v808_v59 = vld [vmem:[%s2096_s4 + $0x68] sm:$0xff] }
 0x11e   :  { %v149_v63 = vadd.f32 %v1918_v58, %v148_v61  ;;  %v809_v61 = vld [vmem:[%s2096_s4 + $0x70] sm:$0xff]  ;;  %v810_v62 = vld [vmem:[%s2096_s4 + $0x78] sm:$0xff] }
 0x120   :  { %v282_v2 = vadd.f32 %v278_v60, %v149_v63  ;;  %v1111_v4 = vpop.f32.mrb[2].mxu0  ;;  %v1676_v60 = vpack.c.bf16 %v808_v59, %v807_v57  ;;  %v1679_v63 = vpack.c.bf16 %v810_v62, %v809_v61 }
 0x121   :  { %v158_v5 = vpop.f32.mrb[3].mxu0  ;;  %v164_v23 = vadd.f32 %v1111_v4, %v1918_v58 }
 0x122   :  { %1688 = vtanh.f32 %v282_v2  ;;  %v159_v17 = vadd.f32 %v1918_v58, %v158_v5 }
 0x124   :  { %v1939_v6 = vpop.f32.mrb[4].mxu0 }
 0x125   :  { %v1941_v7 = vpop.f32.mrb[5].mxu0 }
 0x126   :  { %v169_v29 = vadd.f32 %v1918_v58, %v1941_v7  ;;  %v896_v7 = vld [vmem:[%s2097_s5] ss:$0 sm:$0xff] }
 0x128   :  { %v1943_v8 = vpop.f32.mrb[6].mxu0 }
 0x129   :  { %v1945_v10 = vpop.f32.mrb[7].mxu0  ;;  %v184_v2 = vadd.f32 %v1943_v8, %v1918_v58 }
 0x12a   :  { %v179_v49 = vadd.f32 %v1918_v58, %v1945_v10 }
 0x12c   :  { %v1689_v3 = vpop.eup %1688 }
 0x12d   :  { %1186 = vmatmul.mubr.f32.vlgmr.msra.gmra.mrb[8].mxu0 %v1689_v3 }
 0x12e   :  { %1539 = vmatpush3.bf16.msra.mxu0 %v1821_v9  ;;  %1255 = vmatprep.mubr.msk.f32.mxu0 %vm1757_vm0, %v1758_v1 }
 0x12f   :  { %1540 = vmatprep.subr.bf16.mxu0 %v1756_v0 }
 0x132   :  { %1542 = vmatpush3.bf16.msra.mxu0 %v1824_v15 }
 0x133   :  { %1543 = vmatprep.subr.bf16.mxu0 %v1756_v0 }
 0x136   :  { %1545 = vmatpush3.bf16.msra.mxu0 %v1828_v21 }
 0x137   :  { %1546 = vmatprep.subr.bf16.mxu0 %v1756_v0 }
 0x13a   :  { %1548 = vmatpush3.bf16.msra.mxu0 %v1835_v28 }
 0x13b   :  { %1549 = vmatprep.subr.bf16.mxu0 %v1756_v0 }
 0x13e   :  { %1551 = vmatpush3.bf16.msra.mxu0 %v1839_v34 }
 0x13f   :  { %1552 = vmatprep.subr.bf16.mxu0 %v1756_v0 }
 0x142   :  { %1554 = vmatpush3.bf16.msra.mxu0 %v1843_v40 }
 0x143   :  { %1555 = vmatprep.subr.bf16.mxu0 %v1756_v0 }
 0x146   :  { %1557 = vmatpush3.bf16.msra.mxu0 %v1847_v46 }
 0x147   :  { %1558 = vmatprep.subr.bf16.mxu0 %v1756_v0 }
 0x14a   :  { %1560 = vmatpush3.bf16.msra.mxu0 %v1851_v50 }
 0x14b   :  { %1585 = vmatprep.subr.bf16.mxu0 %v1756_v0 }
 0x200   :  { %v351_v12 = vpop.f32.mrb[8].mxu0 }
 0x201   :  { %v355_v13 = vadd.f32 %v351_v12, %v154_v11  ;;  %v1187_v14 = vpop.f32.mrb[9].mxu0 }
 0x203   :  { %1690 = vtanh.f32 %v355_v13 }
 0x20d   :  { %v1691_v16 = vpop.eup %1690 }
 0x20e   :  { %1221 = vmatmul.mubr.f32.vlgmr.msra.gmra.mrb[2].mxu1 %v1691_v16 }
 0x20f   :  { %1563 = vmatpush3.bf16.msra.mxu1 %v1821_v9  ;;  %1290 = vmatprep.mubr.msk.f32.mxu1 %vm1757_vm0, %v1758_v1 }
 0x210   :  { %1564 = vmatprep.subr.bf16.mxu1 %v1756_v0 }
 0x213   :  { %1566 = vmatpush3.bf16.msra.mxu1 %v1824_v15 }
 0x214   :  { %1567 = vmatprep.subr.bf16.mxu1 %v1756_v0 }
 0x217   :  { %1569 = vmatpush3.bf16.msra.mxu1 %v1828_v21 }
 0x218   :  { %1570 = vmatprep.subr.bf16.mxu1 %v1756_v0 }
 0x21b   :  { %1572 = vmatpush3.bf16.msra.mxu1 %v1835_v28 }
 0x21c   :  { %1573 = vmatprep.subr.bf16.mxu1 %v1756_v0 }
 0x21f   :  { %1575 = vmatpush3.bf16.msra.mxu1 %v1839_v34 }
 0x220   :  { %1576 = vmatprep.subr.bf16.mxu1 %v1756_v0 }
 0x223   :  { %1578 = vmatpush3.bf16.msra.mxu1 %v1843_v40 }
 0x224   :  { %1579 = vmatprep.subr.bf16.mxu1 %v1756_v0 }
 0x227   :  { %1581 = vmatpush3.bf16.msra.mxu1 %v1847_v46 }
 0x228   :  { %1582 = vmatprep.subr.bf16.mxu1 %v1756_v0 }
 0x22b   :  { %1584 = vmatpush3.bf16.msra.mxu1 %v1851_v50 }
 0x22c   :  { %1609 = vmatprep.subr.bf16.mxu1 %v1756_v0 }
 0x2e1   :  { %v424_v18 = vpop.f32.mrb[2].mxu1 }
 0x2e2   :  { %v428_v19 = vadd.f32 %v424_v18, %v159_v17  ;;  %v1222_v20 = vpop.f32.mrb[3].mxu1 }
 0x2e4   :  { %1692 = vtanh.f32 %v428_v19 }
 0x2ee   :  { %v1693_v22 = vpop.eup %1692 }
 0x2ef   :  { %1256 = vmatmul.mubr.f32.vlgmr.msra.gmra.mrb[10].mxu0 %v1693_v22 }
 0x2f0   :  { %1587 = vmatpush3.bf16.msra.mxu0 %v1821_v9  ;;  %1325 = vmatprep.mubr.msk.f32.mxu0 %vm1757_vm0, %v1758_v1 }
 0x2f1   :  { %1588 = vmatprep.subr.bf16.mxu0 %v1756_v0 }
 0x2f4   :  { %1590 = vmatpush3.bf16.msra.mxu0 %v1824_v15 }
 0x2f5   :  { %1591 = vmatprep.subr.bf16.mxu0 %v1756_v0 }
 0x2f8   :  { %1593 = vmatpush3.bf16.msra.mxu0 %v1828_v21 }
 0x2f9   :  { %1594 = vmatprep.subr.bf16.mxu0 %v1756_v0 }
 0x2fc   :  { %1596 = vmatpush3.bf16.msra.mxu0 %v1835_v28 }
 0x2fd   :  { %1597 = vmatprep.subr.bf16.mxu0 %v1756_v0 }
 0x300   :  { %1599 = vmatpush3.bf16.msra.mxu0 %v1839_v34 }
 0x301   :  { %1600 = vmatprep.subr.bf16.mxu0 %v1756_v0 }
 0x304   :  { %1602 = vmatpush3.bf16.msra.mxu0 %v1843_v40 }
 0x305   :  { %1603 = vmatprep.subr.bf16.mxu0 %v1756_v0 }
 0x308   :  { %1605 = vmatpush3.bf16.msra.mxu0 %v1847_v46 }
 0x309   :  { %1606 = vmatprep.subr.bf16.mxu0 %v1756_v0 }
 0x30c   :  { %1608 = vmatpush3.bf16.msra.mxu0 %v1851_v50 }
 0x30d   :  { %1633 = vmatprep.subr.bf16.mxu0 %v1756_v0 }
 0x3c2   :  { %v497_v24 = vpop.f32.mrb[10].mxu0 }
 0x3c3   :  { %v501_v25 = vadd.f32 %v497_v24, %v164_v23  ;;  %v1257_v26 = vpop.f32.mrb[11].mxu0 }
 0x3c5   :  { %1694 = vtanh.f32 %v501_v25 }
 0x3cf   :  { %v1695_v27 = vpop.eup %1694 }
 0x3d0   :  { %1291 = vmatmul.mubr.f32.vlgmr.msra.gmra.mrb[4].mxu1 %v1695_v27 }
 0x3d1   :  { %1611 = vmatpush3.bf16.msra.mxu1 %v1821_v9  ;;  %1360 = vmatprep.mubr.msk.f32.mxu1 %vm1757_vm0, %v1758_v1 }
 0x3d2   :  { %1612 = vmatprep.subr.bf16.mxu1 %v1756_v0 }
 0x3d5   :  { %1614 = vmatpush3.bf16.msra.mxu1 %v1824_v15 }
 0x3d6   :  { %1615 = vmatprep.subr.bf16.mxu1 %v1756_v0 }
 0x3d9   :  { %1617 = vmatpush3.bf16.msra.mxu1 %v1828_v21 }
 0x3da   :  { %1618 = vmatprep.subr.bf16.mxu1 %v1756_v0 }
 0x3dd   :  { %1620 = vmatpush3.bf16.msra.mxu1 %v1835_v28 }
 0x3de   :  { %1621 = vmatprep.subr.bf16.mxu1 %v1756_v0 }
 0x3e1   :  { %1623 = vmatpush3.bf16.msra.mxu1 %v1839_v34 }
 0x3e2   :  { %1624 = vmatprep.subr.bf16.mxu1 %v1756_v0 }
 0x3e5   :  { %1626 = vmatpush3.bf16.msra.mxu1 %v1843_v40 }
 0x3e6   :  { %1627 = vmatprep.subr.bf16.mxu1 %v1756_v0 }
 0x3e9   :  { %1629 = vmatpush3.bf16.msra.mxu1 %v1847_v46 }
 0x3ea   :  { %1630 = vmatprep.subr.bf16.mxu1 %v1756_v0 }
 0x3ed   :  { %1632 = vmatpush3.bf16.msra.mxu1 %v1851_v50 }
 0x3ee   :  { %1657 = vmatprep.subr.bf16.mxu1 %v1756_v0 }
 0x4a3   :  { %v570_v30 = vpop.f32.mrb[4].mxu1 }
 0x4a4   :  { %v574_v31 = vadd.f32 %v570_v30, %v169_v29  ;;  %v1292_v32 = vpop.f32.mrb[5].mxu1 }
 0x4a6   :  { %1696 = vtanh.f32 %v574_v31 }
 0x4b0   :  { %v1697_v33 = vpop.eup %1696 }
 0x4b1   :  { %1326 = vmatmul.mubr.f32.vlgmr.msra.gmra.mrb[12].mxu0 %v1697_v33 }
 0x4b2   :  { %1635 = vmatpush3.bf16.msra.mxu0 %v1821_v9  ;;  %1395 = vmatprep.mubr.msk.f32.mxu0 %vm1757_vm0, %v1758_v1  ;;  %v174_v9 = vadd.f32 %v1939_v6, %v1918_v58 }
 0x4b3   :  { %1636 = vmatprep.subr.bf16.mxu0 %v1756_v0 }
 0x4b6   :  { %1638 = vmatpush3.bf16.msra.mxu0 %v1824_v15 }
 0x4b7   :  { %1639 = vmatprep.subr.bf16.mxu0 %v1756_v0 }
 0x4ba   :  { %1641 = vmatpush3.bf16.msra.mxu0 %v1828_v21 }
 0x4bb   :  { %1642 = vmatprep.subr.bf16.mxu0 %v1756_v0 }
 0x4be   :  { %1644 = vmatpush3.bf16.msra.mxu0 %v1835_v28 }
 0x4bf   :  { %1645 = vmatprep.subr.bf16.mxu0 %v1756_v0 }
 0x4c2   :  { %1647 = vmatpush3.bf16.msra.mxu0 %v1839_v34 }
 0x4c3   :  { %1648 = vmatprep.subr.bf16.mxu0 %v1756_v0 }
 0x4c6   :  { %1650 = vmatpush3.bf16.msra.mxu0 %v1843_v40  ;;  %v1661_v40 = vpack.c.bf16 %v798_v39, %v797_v37 }
 0x4c7   :  { %1651 = vmatprep.subr.bf16.mxu0 %v1756_v0 }
 0x4ca   :  { %1653 = vmatpush3.bf16.msra.mxu0 %v1847_v46  ;;  %v803_v46 = vld [vmem:[%s2096_s4 + $0x40] sm:$0xff] }
 0x4cb   :  { %1654 = vmatprep.subr.bf16.mxu0 %v1756_v0  ;;  %v1670_v48 = vpack.c.bf16 %v804_v47, %v803_v46 }
 0x4ce   :  { %1656 = vmatpush3.bf16.msra.mxu0 %v1851_v50 }
 0x584   :  { %v643_v15 = vpop.f32.mrb[12].mxu0 }
 0x585   :  { %v647_v21 = vadd.f32 %v643_v15, %v174_v9  ;;  %v1327_v28 = vpop.f32.mrb[13].mxu0 }
 0x587   :  { %1698 = vtanh.f32 %v647_v21 }
 0x591   :  { %v1699_v34 = vpop.eup %1698 }
 0x592   :  { %1361 = vmatmul.mubr.f32.vlgmr.msra.gmra.mrb[6].mxu1 %v1699_v34 }
 0x593   :  { %1430 = vmatprep.mubr.msk.f32.mxu1 %vm1757_vm0, %v1758_v1  ;;  %1659 = vmatpush3.bf16.msra.mxu1 %v1658_v38  ;;  %v799_v1 = vld [vmem:[%s2096_s4 + $0x20] sm:$0xff] }
 0x594   :  { %1660 = vmatprep.subr.bf16.mxu1 %v1756_v0  ;;  %v1664_v42 = vpack.c.bf16 %v800_v41, %v799_v1 }
 0x597   :  { %1662 = vmatpush3.bf16.msra.mxu1 %v1661_v40 }
 0x598   :  { %1663 = vmatprep.subr.bf16.mxu1 %v1756_v0 }
 0x59b   :  { %1665 = vmatpush3.bf16.msra.mxu1 %v1664_v42 }
 0x59c   :  { %1666 = vmatprep.subr.bf16.mxu1 %v1756_v0 }
 0x59f   :  { %1668 = vmatpush3.bf16.msra.mxu1 %v1667_v45 }
 0x5a0   :  { %1669 = vmatprep.subr.bf16.mxu1 %v1756_v0 }
 0x5a3   :  { %1671 = vmatpush3.bf16.msra.mxu1 %v1670_v48 }
 0x5a4   :  { %1672 = vmatprep.subr.bf16.mxu1 %v1756_v0 }
 0x5a7   :  { %1674 = vmatpush3.bf16.msra.mxu1 %v1673_v56 }
 0x5a8   :  { %1675 = vmatprep.subr.bf16.mxu1 %v1756_v0 }
 0x5ab   :  { %1677 = vmatpush3.bf16.msra.mxu1 %v1676_v60 }
 0x5ac   :  { %1678 = vmatprep.subr.bf16.mxu1 %v1756_v0 }
 0x5af   :  { %1680 = vmatpush3.bf16.msra.mxu1 %v1679_v63 }
 0x665   :  { %v716_v50 = vpop.f32.mrb[6].mxu1 }
 0x666   :  { %v720_v51 = vadd.f32 %v716_v50, %v179_v49  ;;  %v1362_v52 = vpop.f32.mrb[7].mxu1 }
 0x668   :  { %1700 = vtanh.f32 %v720_v51 }
 0x672   :  { %v1701_v53 = vpop.eup %1700 }
 0x673   :  { %1396 = vmatmul.mubr.f32.vlgmr.msra.gmra.mrb[14].mxu0 %v1701_v53 }
 0x746   :  { %v789_v3 = vpop.f32.mrb[14].mxu0 }
 0x747   :  { %v793_v4 = vadd.f32 %v789_v3, %v184_v2  ;;  %v1397_v5 = vpop.f32.mrb[15].mxu0 }
 0x749   :  { %1702 = vtanh.f32 %v793_v4 }
 0x753   :  { %v1703_v6 = vpop.eup %1702 }
 0x754   :  { %1431 = vmatmul.mubr.f32.vlgmr.msra.gmra.mrb[8].mxu1 %v1703_v6 }
 0x827   :  { %v884_v10 = vpop.f32.mrb[8].mxu1 }
 0x828   :  { %v885_v11 = vadd.f32 %v896_v7, %v884_v10  ;;  %v1432_v12 = vpop.f32.mrb[9].mxu1 }
 0x82a   :  { %888 = vst [vmem:[%s2098_s6] sm:$0xff] %v885_v11 }
 0x82b   :  { %893 = vsyncpa [#allocation4], 1 }
 0x82c   :  { %894 = vsyncpa [#allocation6], 1 }

</bundles_post_ra>
